<compile_context>
chip_gen: v7x
topology: tpu7x:2x2x1
jax: 0.10.0
libtpu: 0.0.40
codegen_flags: <defaults>
</compile_context>

<pallas_src>
import jax
import jax.numpy as jnp
from jax import lax
from jax.experimental import pallas as pl
from jax.experimental.pallas import tpu as pltpu


def discriminator_kernel(x_ref, w1_ref, b1_ref, w2_ref, b2_ref, o_ref):
    # Layer 1 on the MXU: cast x to bf16 in-kernel (hidden under the DMA), f32 accumulate.
    x_bf16 = x_ref[...].astype(jnp.bfloat16)
    h = jnp.dot(x_bf16, w1_ref[...], preferred_element_type=jnp.float32)   # (TB, H)
    h = h + b1_ref[...]                                                    # (1, H) broadcast
    h = jnp.maximum(h, 0.01 * h)                                           # LeakyReLU(0.01)

    # Layer 2: contract H of the (1, H) w2 row against H of h -> lane-dense (1, TB) row,
    # with the transpose folded into the MXU operand load (no explicit h.T).
    z = lax.dot_general(w2_ref[...], h, (((1,), (1,)), ((), ())),
                        preferred_element_type=jnp.float32)                # (1, TB)
    z = z + b2_ref[0, 0]                                                   # scalar from SMEM

    # Sigmoid via EUP exp + approximate EUP reciprocal (no f32 VPU divide).
    o_ref[...] = pl.reciprocal(1.0 + jnp.exp(-z), approx=True).astype(o_ref.dtype)


def _round_up(n, m):
    return ((n + m - 1) // m) * m


def _choose_tile(B, block_b):
    """Pick (tile_rows, num_tiles). Multi-tile lane-dense output blocks need tb % 128 == 0."""
    if B <= 128:
        # Single tile covering the whole small batch (rounded for sublane packing).
        return _round_up(B, 16), 1
    if B <= 256:
        # Two 128-row tiles so both v7x TensorCores get work.
        return 128, pl.cdiv(B, 128)
    tb_cap = max(128, (block_b // 128) * 128)
    # At least 2 near-even tiles (v7x megacore balance), as large as possible up to the cap.
    tb = min(tb_cap, _round_up(pl.cdiv(B, 2), 128))
    return tb, pl.cdiv(B, tb)


def discriminator_forward(x, w1, b1, w2, b2, *, block_b=1024):
    """x: (B, D) f32; w1: (D, H); b1: (H,); w2: (H, 1); b2: (1,). Returns (B, 1) f32."""
    B, D = x.shape
    H = w1.shape[1]
    assert w1.shape == (D, H)
    assert w2.shape == (H, 1)

    tb, num_tiles = _choose_tile(B, block_b)
    b_pad = tb * num_tiles

    # No wrapper pad/cast of x: stream it as f32; partial last block rows are undefined
    # and their outputs are sliced off below.
    x_f32 = x.astype(jnp.float32)
    w1_bf16 = w1.astype(jnp.bfloat16)                  # bf16 MXU path, f32 accumulation
    b1_2d = b1.reshape(1, H).astype(jnp.float32)
    w2_row = w2.reshape(1, H).astype(jnp.float32)      # transposed weight, lane-dense row
    b2_2d = b2.reshape(1, 1).astype(jnp.float32)

    cost = pl.CostEstimate(
        flops=2 * b_pad * D * H + 2 * b_pad * H,
        transcendentals=2 * b_pad,                     # exp + reciprocal per element
        bytes_accessed=int(x_f32.size * 4 + w1_bf16.size * 2
                           + (b1_2d.size + w2_row.size + b2_2d.size + b_pad) * 4),
    )

    out_row = pl.pallas_call(
        discriminator_kernel,
        out_shape=jax.ShapeDtypeStruct((1, b_pad), jnp.float32),
        grid=(num_tiles,),
        in_specs=[
            pl.BlockSpec((tb, D), lambda i: (i, 0)),            # x streams through VMEM
            pl.BlockSpec((D, H), lambda i: (0, 0)),             # W1 stays resident
            pl.BlockSpec((1, H), lambda i: (0, 0)),             # b1 stays resident
            pl.BlockSpec((1, H), lambda i: (0, 0)),             # w2 row stays resident
            pl.BlockSpec(memory_space=pltpu.MemorySpace.SMEM),  # b2 scalar in SMEM
        ],
        out_specs=pl.BlockSpec((1, tb), lambda i: (0, i)),      # lane-dense score row
        compiler_params=pltpu.CompilerParams(
            dimension_semantics=("parallel",)),
        cost_estimate=cost,
    )(x_f32, w1_bf16, b1_2d, w2_row, b2_2d)

    # (1, b_pad) lane-dense scores -> PyTorch-style (B, 1) column, dropping padded rows.
    return out_row.reshape(b_pad, 1)[:B]


def init_params(key, img_size, hidden=128):
    # Deterministic synthetic init (PyTorch-Linear-like uniform bounds).
    k1, k2, k3, k4 = jax.random.split(key, 4)
    bound1 = 1.0 / (img_size ** 0.5)
    bound2 = 1.0 / (hidden ** 0.5)
    w1 = jax.random.uniform(k1, (img_size, hidden), jnp.float32, -bound1, bound1)
    b1 = jax.random.uniform(k2, (hidden,), jnp.float32, -bound1, bound1)
    w2 = jax.random.uniform(k3, (hidden, 1), jnp.float32, -bound2, bound2)
    b2 = jax.random.uniform(k4, (1,), jnp.float32, -bound2, bound2)
    return w1, b1, w2, b2


def reference_forward(x, w1, b1, w2, b2):
    h = x @ w1 + b1
    h = jnp.where(h > 0, h, 0.01 * h)
    z = h @ w2 + b2
    return 1.0 / (1.0 + jnp.exp(-z))


if __name__ == "__main__":
    key = jax.random.PRNGKey(0)
    kx1, kx2, kp = jax.random.split(key, 3)

    img_size = 784   # flattened 28x28 MNIST image
    hidden = 128
    w1, b1, w2, b2 = init_params(kp, img_size, hidden)

    # Case 1: tiny batch -> single batch tile (tb = 16).
    x_small = jax.random.normal(kx1, (16, img_size), dtype=jnp.float32)
    out_small = jax.block_until_ready(discriminator_forward(x_small, w1, b1, w2, b2))
    ref_small = reference_forward(x_small, w1, b1, w2, b2)
    assert out_small.shape == (16, 1)
    assert jnp.allclose(out_small, ref_small, atol=1e-2, rtol=1e-2)

    # Case 2: non-tile-aligned batch with multiple streaming tiles and a partial last
    # block (block_b=128 -> grid=(3,)), no jnp.pad of x.
    x_big = jax.random.normal(kx2, (300, img_size), dtype=jnp.float32)
    out_big = jax.block_until_ready(
        discriminator_forward(x_big, w1, b1, w2, b2, block_b=128))
    ref_big = reference_forward(x_big, w1, b1, w2, b2)
    assert out_big.shape == (300, 1)
    assert jnp.allclose(out_big, ref_big, atol=1e-2, rtol=1e-2)

    # Case 3: same batch with the default large tile (two near-even 256-row tiles).
    out_big2 = jax.block_until_ready(discriminator_forward(x_big, w1, b1, w2, b2))
    assert out_big2.shape == (300, 1)
    assert jnp.allclose(out_big2, ref_big, atol=1e-2, rtol=1e-2)

    print("KERNEL_OK")
</pallas_src>

<mosaic_0001>
module attributes {stable_mosaic.version = 11 : i64} {
  func.func @discriminator_kernel(%arg0: i32, %arg1: memref<16x784xf32, #tpu.memory_space<vmem>>, %arg2: memref<784x128xbf16, #tpu.memory_space<vmem>>, %arg3: memref<1x128xf32, #tpu.memory_space<vmem>>, %arg4: memref<1x128xf32, #tpu.memory_space<vmem>>, %arg5: memref<1x1xf32, #tpu.memory_space<smem>>, %arg6: memref<1x16xf32, #tpu.memory_space<vmem>>) attributes {dimension_semantics = [#tpu.dimension_semantics<parallel>], iteration_bounds = array<i64: 1>, scalar_prefetch = 0 : i64, scratch_operands = 0 : i64, tpu.core_type = #tpu.core_type<tc>, window_params = [{transform_indices = @transform_0, window_bounds = array<i64: 16, 784>}, {pipeline_mode = #tpu.pipeline_mode<synchronous>, transform_indices = @transform_1, window_bounds = array<i64: 784, 128>}, {pipeline_mode = #tpu.pipeline_mode<synchronous>, transform_indices = @transform_2, window_bounds = array<i64: 1, 128>}, {pipeline_mode = #tpu.pipeline_mode<synchronous>, transform_indices = @transform_3, window_bounds = array<i64: 1, 128>}, {transform_indices = @transform_4, window_bounds = array<i64: 1, 1>}, {transform_indices = @transform_5, window_bounds = array<i64: 1, 16>}]} {
    %c0 = arith.constant 0 : index
    %c0_0 = arith.constant 0 : index
    %0 = vector.load %arg1[%c0, %c0_0] : memref<16x784xf32, #tpu.memory_space<vmem>>, vector<16x784xf32>
    %1 = arith.truncf %0 : vector<16x784xf32> to vector<16x784xbf16>
    %c0_1 = arith.constant 0 : index
    %c0_2 = arith.constant 0 : index
    %2 = vector.load %arg2[%c0_1, %c0_2] : memref<784x128xbf16, #tpu.memory_space<vmem>>, vector<784x128xbf16>
    %cst = arith.constant dense<0.000000e+00> : vector<16x128xf32>
    %3 = tpu.matmul %1, %2, %cst {dimension_numbers = #tpu.dot_dimension_numbers<[1], [0], [0], [1], [0, 0, 1, 1], [], []>} : vector<16x784xbf16>, vector<784x128xbf16>, vector<16x128xf32> -> vector<16x128xf32>
    %c0_3 = arith.constant 0 : index
    %c0_4 = arith.constant 0 : index
    %4 = vector.load %arg3[%c0_3, %c0_4] : memref<1x128xf32, #tpu.memory_space<vmem>>, vector<1x128xf32>
    %5 = vector.broadcast %4 : vector<1x128xf32> to vector<16x128xf32>
    %6 = arith.addf %3, %5 : vector<16x128xf32>
    %cst_5 = arith.constant 0.00999999977 : f32
    %7 = vector.broadcast %cst_5 : f32 to vector<16x128xf32>
    %8 = arith.mulf %7, %6 : vector<16x128xf32>
    %9 = arith.maximumf %6, %8 : vector<16x128xf32>
    %c0_6 = arith.constant 0 : index
    %c0_7 = arith.constant 0 : index
    %10 = vector.load %arg4[%c0_6, %c0_7] : memref<1x128xf32, #tpu.memory_space<vmem>>, vector<1x128xf32>
    %cst_8 = arith.constant dense<0.000000e+00> : vector<1x16xf32>
    %11 = tpu.matmul %10, %9, %cst_8 {dimension_numbers = #tpu.dot_dimension_numbers<[1], [1], [0], [0], [0, 0, 1, 0], [], []>} : vector<1x128xf32>, vector<16x128xf32>, vector<1x16xf32> -> vector<1x16xf32>
    %c0_9 = arith.constant 0 : index
    %c0_10 = arith.constant 0 : index
    %12 = memref.load %arg5[%c0_9, %c0_10] : memref<1x1xf32, #tpu.memory_space<smem>>
    %13 = vector.broadcast %12 : f32 to vector<1x16xf32>
    %14 = arith.addf %11, %13 : vector<1x16xf32>
    %cst_11 = arith.constant 0.000000e+00 : f32
    %15 = vector.broadcast %cst_11 : f32 to vector<1x16xf32>
    %16 = arith.subf %15, %14 : vector<1x16xf32>
    %17 = math.exp %16 : vector<1x16xf32>
    %cst_12 = arith.constant 1.000000e+00 : f32
    %18 = vector.broadcast %cst_12 : f32 to vector<1x16xf32>
    %19 = arith.addf %18, %17 : vector<1x16xf32>
    %20 = tpu.reciprocal %19 {approx = true} : vector<1x16xf32> -> vector<1x16xf32>
    %c0_13 = arith.constant 0 : index
    %c0_14 = arith.constant 0 : index
    %21 = vector.load %arg6[%c0_13, %c0_14] : memref<1x16xf32, #tpu.memory_space<vmem>>, vector<1x16xf32>
    tpu.vector_store %arg6[%c0_13, %c0_14], %20 {strides = array<i32>} : memref<1x16xf32, #tpu.memory_space<vmem>>, vector<1x16xf32>,
    return
  }
  func.func @transform_0(%arg0: i32) -> (i32, i32) {
    %c0_i32 = arith.constant 0 : i32
    %c0_i32_0 = arith.constant 0 : i32
    return %arg0, %c0_i32 : i32, i32
  }
  func.func @transform_1(%arg0: i32) -> (i32, i32) {
    %c0_i32 = arith.constant 0 : i32
    %c0_i32_0 = arith.constant 0 : i32
    %c0_i32_1 = arith.constant 0 : i32
    return %c0_i32, %c0_i32_0 : i32, i32
  }
  func.func @transform_2(%arg0: i32) -> (i32, i32) {
    %c0_i32 = arith.constant 0 : i32
    %c0_i32_0 = arith.constant 0 : i32
    %c0_i32_1 = arith.constant 0 : i32
    return %c0_i32, %c0_i32_0 : i32, i32
  }
  func.func @transform_3(%arg0: i32) -> (i32, i32) {
    %c0_i32 = arith.constant 0 : i32
    %c0_i32_0 = arith.constant 0 : i32
    %c0_i32_1 = arith.constant 0 : i32
    return %c0_i32, %c0_i32_0 : i32, i32
  }
  func.func @transform_4(%arg0: i32) -> (i32, i32) {
    %c0_i32 = arith.constant 0 : i32
    %c0_i32_0 = arith.constant 0 : i32
    %c0_i32_1 = arith.constant 0 : i32
    return %c0_i32, %c0_i32_0 : i32, i32
  }
  func.func @transform_5(%arg0: i32) -> (i32, i32) {
    %c0_i32 = arith.constant 0 : i32
    %c0_i32_0 = arith.constant 0 : i32
    return %c0_i32, %arg0 : i32, i32
  }
}

</mosaic_0001>

<bundles_post_ra>
// kernel: tpu_custom_call.1
= control target key start
LH: loop header
LB: loop body
LE: loop exit
PB: predicated region body
PF: predicated region fallthrough
CT: control target
= control target key end

     0   :  { %11 = vsyncpa [#allocation4], 0  ;;  %s1099_s0 = inlined_call_operand.hbm [shape: f32[16,784], index: 0, kind: input, shape index: {}]   ;;  %s1100_s1 = inlined_call_operand.hbm [shape: bf16[784,128], index: 1, kind: input, shape index: {}]   ;;  %s1101_s2 = inlined_call_operand.vmem [shape: f32[1,128], index: 2, kind: input, shape index: {}]   ;;  %s1102_s3 = inlined_call_operand.vmem [shape: f32[1,128], index: 3, kind: input, shape index: {}]   ;;  %s1103_s4 = inlined_call_operand.<no memory space> [shape: f32[1,1], index: 4, kind: input, shape index: {}]   ;;  %s1104_s5 = inlined_call_operand.hbm [shape: f32[1,16], index: 5, kind: output, shape index: {}]  }
   0x1   :  { %12 = vsyncpa [#allocation7], 0 }
   0x2   :  { %13 = vsyncpa [#allocation5], 0  ;;  %s1012_s18 = smov [#allocation3]   ;;  %s940_s22 = scalar_lea.hbm %s1099_s0, 1792 }
   0x3   :  { %s19_s19 = sshll.u32 %s1012_s18, 4  ;;  %p941_p0 = scmp.ne.s32.totalorder %s1099_s0, %s940_s22  ;;  %s20_s19 = int_to_ptr.vmem [resolvable:$true] %s19_s19 }
   0x4   :  { %p944_p1 = scmp.lt.u32.totalorder %s940_s22, %s1099_s0 }
   0x6   :  { %p946_p2 = pnand %p944_p1, %p941_p0 }
   0x8   :  { %949 = shalt.err (!%p946_p2)
}
   0x9   :  { %s950_s27 = scalar_lea.vmem %s20_s19, 1792  ;;  %p955_p4 = scmp.lt.s32.totalorder %s20_s19, %s20_s19 }
   0xa   :  { %p951_p3 = scmp.ne.s32.totalorder %s20_s19, %s950_s27  ;;  %p956_p5 = scmp.lt.s32.totalorder %s950_s27, %s950_s27 }
   0xc   :  { %p957_p6 = por %p956_p5, %p955_p4 }
   0xe   :  { %p958_p7 = pnand %p957_p6, %p951_p3 }
  0x10   :  { %961 = shalt.err (!%p958_p7)
}
  0x11   :  { %s1013_s28 = smov 896   ;;  %s1014_s29 = smov 56  }
  0x12   :  { %25 = dma.hbm_to_vmem [thread:$0]  %s1099_s0, 1792, %s20_s19, [#allocation4], %s1013_s28, %s1013_s28, %s1014_s29  }
  0x13   :  { %s1015_s7 = smov [#allocation6]   ;;  %s962_s11 = scalar_lea.hbm %s1100_s1, 6272 }
  0x14   :  { %s31_s8 = sshll.u32 %s1015_s7, 4  ;;  %p963_p8 = scmp.ne.s32.totalorder %s1100_s1, %s962_s11  ;;  %s32_s8 = int_to_ptr.vmem [resolvable:$true] %s31_s8 }
  0x15   :  { %p966_p9 = scmp.lt.u32.totalorder %s962_s11, %s1100_s1 }
  0x17   :  { %p968_p10 = pnand %p966_p9, %p963_p8 }
  0x19   :  { %971 = shalt.err (!%p968_p10)
}
  0x1a   :  { %s972_s16 = scalar_lea.vmem %s32_s8, 6272  ;;  %p977_p12 = scmp.lt.s32.totalorder %s32_s8, %s32_s8 }
  0x1b   :  { %p973_p11 = scmp.ne.s32.totalorder %s32_s8, %s972_s16  ;;  %p978_p13 = scmp.lt.s32.totalorder %s972_s16, %s972_s16 }
  0x1d   :  { %p979_p0 = por %p978_p13, %p977_p12 }
  0x1f   :  { %p980_p1 = pnand %p979_p0, %p973_p11 }
  0x21   :  { %983 = shalt.err (!%p980_p1)
}
  0x22   :  { %s1016_s0 = smov 64   ;;  %s1017_s17 = smov 4  }
  0x23   :  { %37 = dma.hbm_to_vmem [thread:$0]  %s1100_s1, 6272, %s32_s8, [#allocation7], %s1016_s0, %s1016_s0, %s1017_s17  }
  0x24   :  { %1006 = dma.done.wait [#allocation4], 1792  }
  0x25   :  { %1007 = vsyncadd [#allocation4], 4294965504 }
  0x26   :  { %1008 = dma.done.wait [#allocation7], 6272  }
  0x27   :  { %1009 = vsyncadd [#allocation7], 4294961024  ;;  %v887_v0 = vld [vmem:[#allocation6 + $0x40] sm:$0xff]   ;;  %v891_v4 = vld [vmem:[#allocation6 + $0x48] sm:$0xff]   ;;  %v1018_v43 = vmov 0.0   ;;  %vm1019_vm0 = vmmov 0  }
  0x28   :  { %v888_v1 = vld [vmem:[#allocation6] sm:$0xff]   ;;  %790 = vmatprep.subr.bf16.mxu0 %v887_v0  ;;  %v892_v5 = vld [vmem:[#allocation6 + $0x8] sm:$0xff]   ;;  %v895_v8 = vld [vmem:[#allocation6 + $0x50] sm:$0xff]   ;;  %vm471_vm1 = vcmask 130048   ;;  %s1021_s24 = smov [#allocation8]   ;;  %vm721_vm2 = vcmask 122880  }
  0x29   :  { %v889_v2 = vld [vmem:[#allocation6 + $0xc0] sm:$0xff]   ;;  %791 = vmatpush3.bf16.msra.mxu0 %v888_v1  ;;  %v893_v6 = vld [vmem:[#allocation6 + $0xc8] sm:$0xff]   ;;  %v896_v9 = vld [vmem:[#allocation6 + $0x10] sm:$0xff]   ;;  %s729_s25 = sshll.u32 %s1021_s24, 4  ;;  %s730_s25 = int_to_ptr.vmem [resolvable:$true] %s729_s25 }
  0x2a   :  { %v890_v3 = vld [vmem:[#allocation6 + $0x80] sm:$0xff]   ;;  %812 = vmatprep.subr.bf16.mxu1 %v889_v2  ;;  %792 = vmatprep.subr.bf16.mxu0 %v891_v4  ;;  %v894_v7 = vld [vmem:[#allocation6 + $0x88] sm:$0xff]   ;;  %v897_v10 = vld [vmem:[#allocation6 + $0xd0] sm:$0xff]   ;;  %s988_s26 = scalar_lea.vmem %s730_s25, 32  ;;  %p989_p3 = scmp.lt.s32.totalorder %s730_s25, %s730_s25 }
  0x2b   :  { %813 = vmatpush3.bf16.msra.mxu1 %v890_v3  ;;  %v898_v11 = vld [vmem:[#allocation6 + $0x90] sm:$0xff]   ;;  %v899_v12 = vld [vmem:[#allocation6 + $0x58] sm:$0xff]   ;;  %v903_v16 = vld [vmem:[#allocation6 + $0x60] sm:$0xff]  }
  0x2c   :  { %814 = vmatprep.subr.bf16.mxu1 %v893_v6  ;;  %v900_v13 = vld [vmem:[#allocation6 + $0x18] sm:$0xff]   ;;  %v904_v17 = vld [vmem:[#allocation6 + $0x20] sm:$0xff]   ;;  %v907_v20 = vld [vmem:[#allocation6 + $0x68] sm:$0xff]  }
  0x2d   :  { %793 = vmatpush3.bf16.msra.mxu0 %v892_v5  ;;  %v901_v14 = vld [vmem:[#allocation6 + $0xd8] sm:$0xff]   ;;  %v905_v18 = vld [vmem:[#allocation6 + $0xe0] sm:$0xff]   ;;  %v908_v21 = vld [vmem:[#allocation6 + $0x28] sm:$0xff]  }
  0x2e   :  { %794 = vmatprep.subr.bf16.mxu0 %v895_v8  ;;  %v902_v15 = vld [vmem:[#allocation6 + $0x98] sm:$0xff]   ;;  %v906_v19 = vld [vmem:[#allocation6 + $0xa0] sm:$0xff]   ;;  %v909_v22 = vld [vmem:[#allocation6 + $0xe8] sm:$0xff]  }
  0x2f   :  { %815 = vmatpush3.bf16.msra.mxu1 %v894_v7  ;;  %v910_v23 = vld [vmem:[#allocation6 + $0xa8] sm:$0xff]   ;;  %v911_v24 = vld [vmem:[#allocation6 + $0x70] sm:$0xff]   ;;  %v915_v28 = vld [vmem:[#allocation6 + $0x78] sm:$0xff]   ;;  %v1020_v7 = vmov 0.0|0.0  }
  0x30   :  { %816 = vmatprep.subr.bf16.mxu1 %v897_v10  ;;  %v912_v25 = vld [vmem:[#allocation6 + $0x30] sm:$0xff]   ;;  %v916_v29 = vld [vmem:[#allocation6 + $0x38] sm:$0xff]   ;;  %v58_v36 = vld [vmem:[#allocation3 + $0x38] sm:$0xff] }
  0x31   :  { %795 = vmatpush3.bf16.msra.mxu0 %v896_v9  ;;  %v913_v26 = vld [vmem:[#allocation6 + $0xf0] sm:$0xff]   ;;  %v917_v30 = vld [vmem:[#allocation6 + $0xf8] sm:$0xff]   ;;  %v919_v38 = vld [vmem:[#allocation6 + $0x140] sm:$0xff]  }
  0x32   :  { %796 = vmatprep.subr.bf16.mxu0 %v899_v12  ;;  %v914_v27 = vld [vmem:[#allocation6 + $0xb0] sm:$0xff]   ;;  %v52_v31 = vld [vmem:[#allocation3 + $0x8] sm:$0xff]  ;;  %v54_v39 = vld [vmem:[#allocation3 + $0x18] sm:$0xff] }
  0x33   :  { %817 = vmatpush3.bf16.msra.mxu1 %v898_v11  ;;  %v59_v32 = vld [vmem:[#allocation3 + $0x40] sm:$0xff]  ;;  %v918_v34 = vld [vmem:[#allocation6 + $0xb8] sm:$0xff]   ;;  %v61_v40 = vld [vmem:[#allocation3 + $0x50] sm:$0xff] }
  0x34   :  { %818 = vmatprep.subr.bf16.mxu1 %v901_v14  ;;  %v66_v33 = vpack.c.bf16 %v59_v32, %v52_v31  ;;  %v51_v35 = vld [vmem:[#allocation3] sm:$0xff]  ;;  %v68_v41 = vpack.c.bf16 %v61_v40, %v54_v39  ;;  %v920_v42 = vld [vmem:[#allocation6 + $0x100] sm:$0xff]   ;;  %v60_v45 = vld [vmem:[#allocation3 + $0x48] sm:$0xff] }
  0x35   :  { %797 = vmatpush3.bf16.msra.mxu0 %v900_v13  ;;  %v65_v37 = vpack.c.bf16 %v58_v36, %v51_v35  ;;  %v53_v44 = vld [vmem:[#allocation3 + $0x10] sm:$0xff]  ;;  %v921_v47 = vld [vmem:[#allocation6 + $0x148] sm:$0xff]   ;;  %v923_v49 = vld [vmem:[#allocation6 + $0x150] sm:$0xff]  }
  0x36   :  { %798 = vmatprep.subr.bf16.mxu0 %v903_v16  ;;  %507 = vmatprep.mubr.bf16.mxu0 %v66_v33  ;;  %v67_v46 = vpack.c.bf16 %v60_v45, %v53_v44  ;;  %v922_v48 = vld [vmem:[#allocation6 + $0x108] sm:$0xff]   ;;  %v924_v50 = vld [vmem:[#allocation6 + $0x110] sm:$0xff]   ;;  %v925_v51 = vld [vmem:[#allocation6 + $0x158] sm:$0xff]   ;;  %v645_v45 = vstv %s1103_s4 }
  0x37   :  { %819 = vmatpush3.bf16.msra.mxu1 %v902_v15  ;;  %548 = vmatprep.mubr.bf16.mxu1 %v68_v41  ;;  %v926_v52 = vld [vmem:[#allocation6 + $0x118] sm:$0xff]   ;;  %v927_v53 = vld [vmem:[#allocation6 + $0x160] sm:$0xff]   ;;  %v929_v55 = vld [vmem:[#allocation6 + $0x168] sm:$0xff]  }
  0x38   :  { %820 = vmatprep.subr.bf16.mxu1 %v905_v18  ;;  %v928_v54 = vld [vmem:[#allocation6 + $0x120] sm:$0xff]   ;;  %v56_v57 = vld [vmem:[#allocation3 + $0x28] sm:$0xff]  ;;  %v63_v58 = vld [vmem:[#allocation3 + $0x60] sm:$0xff] }
  0x39   :  { %799 = vmatpush3.bf16.msra.mxu0 %v904_v17  ;;  %v935_v56 = vld [vmem:[#allocation6 + $0x180] sm:$0xff]   ;;  %v930_v59 = vld [vmem:[#allocation6 + $0x128] sm:$0xff]   ;;  %v70_v60 = vpack.c.bf16 %v63_v58, %v56_v57  ;;  %v64_v62 = vld [vmem:[#allocation3 + $0x68] sm:$0xff] }
  0x3a   :  { %800 = vmatprep.subr.bf16.mxu0 %v907_v20  ;;  %v57_v61 = vld [vmem:[#allocation3 + $0x30] sm:$0xff]  ;;  %v931_v63 = vld [vmem:[#allocation6 + $0x170] sm:$0xff]   ;;  %v933_v2 = vld [vmem:[#allocation6 + $0x178] sm:$0xff]  }
  0x3b   :  { %821 = vmatpush3.bf16.msra.mxu1 %v906_v19  ;;  %v71_v0 = vpack.c.bf16 %v64_v62, %v57_v61  ;;  %v932_v1 = vld [vmem:[#allocation6 + $0x130] sm:$0xff]   ;;  %v934_v3 = vld [vmem:[#allocation6 + $0x138] sm:$0xff]   ;;  %v62_v5 = vld [vmem:[#allocation3 + $0x58] sm:$0xff] }
  0x3c   :  { %822 = vmatprep.subr.bf16.mxu1 %v909_v22  ;;  %v55_v4 = vld [vmem:[#allocation3 + $0x20] sm:$0xff] }
  0x3d   :  { %801 = vmatpush3.bf16.msra.mxu0 %v908_v21  ;;  %v69_v6 = vpack.c.bf16 %v62_v5, %v55_v4  ;;  %v739_v9 = vld [vmem:[%s1101_s2] ss:$0 sm:$0xff] }
  0x3e   :  { %802 = vmatprep.subr.bf16.mxu0 %v911_v24  ;;  %v643_v44 = vld [vmem:[%s1102_s3] sm:$0x1]  ;;  %s984_s3 = scalar_lea.vmem %s730_s25, 16 }
  0x3f   :  { %823 = vmatpush3.bf16.msra.mxu1 %v910_v23  ;;  %p985_p2 = scmp.ne.s32.totalorder %s730_s25, %s984_s3  ;;  %p990_p4 = scmp.lt.s32.totalorder %s988_s26, %s984_s3 }
  0x40   :  { %824 = vmatprep.subr.bf16.mxu1 %v913_v26 }
  0x41   :  { %803 = vmatpush3.bf16.msra.mxu0 %v912_v25  ;;  %p991_p5 = por %p990_p4, %p989_p3 }
  0x42   :  { %804 = vmatprep.subr.bf16.mxu0 %v915_v28 }
  0x43   :  { %825 = vmatpush3.bf16.msra.mxu1 %v914_v27  ;;  %p992_p6 = pnand %p991_p5, %p985_p2 }
  0x44   :  { %826 = vmatprep.subr.bf16.mxu1 %v917_v30 }
  0x45   :  { %805 = vmatpush3.bf16.msra.mxu0 %v916_v29 }
  0x46   :  { %834 = vmatprep.subr.bf16.mxu0 %v919_v38 }
  0x47   :  { %827 = vmatpush3.bf16.msra.mxu1 %v918_v34 }
  0x48   :  { %861 = vmatprep.subr.bf16.mxu1 %v1018_v43  ;;  %508 = vmatmul.mubr.bf16.vlgmr.msra.gmra.mrb[0].mxu0 %v65_v37 }
  0x49   :  { %835 = vmatpush3.bf16.msra.mxu0 %v920_v42  ;;  %589 = vmatprep.mubr.bf16.mxu0 %v70_v60 }
  0x4a   :  { %549 = vmatmul.mubr.bf16.vlgmr.msra.gmra.mrb[0].mxu1 %v67_v46  ;;  %836 = vmatprep.subr.bf16.mxu0 %v921_v47 }
  0x4b   :  { %863 = vmatprep.mubr.msk.bf16.mxu1 %vm1019_vm0, %v1018_v43  ;;  %862 = vmatpush3.bf16.msra.mxu1 %v935_v56 }
  0x4c   :  { %874 = vmatprep.subr.bf16.mxu1 %v1020_v7 }
  0x4d   :  { %837 = vmatpush3.bf16.msra.mxu0 %v922_v48 }
  0x4e   :  { %838 = vmatprep.subr.bf16.mxu0 %v923_v49 }
  0x51   :  { %839 = vmatpush3.bf16.msra.mxu0 %v924_v50 }
  0x52   :  { %840 = vmatprep.subr.bf16.mxu0 %v925_v51  ;;  %864 = vmatmul.mubr.msk.bf16.vlgmr.msra.gmra.mrb[4].mxu1 %vm471_vm1, %v71_v0 }
  0x53   :  { %871 = vmatprep.mubr.msk.f32.mxu1 %vm1019_vm0, %v1018_v43 }
  0x55   :  { %841 = vmatpush3.bf16.msra.mxu0 %v926_v52 }
  0x56   :  { %842 = vmatprep.subr.bf16.mxu0 %v927_v53 }
  0x59   :  { %843 = vmatpush3.bf16.msra.mxu0 %v928_v54 }
  0x5a   :  { %844 = vmatprep.subr.bf16.mxu0 %v929_v55 }
  0x5d   :  { %845 = vmatpush3.bf16.msra.mxu0 %v930_v59 }
  0x5e   :  { %846 = vmatprep.subr.bf16.mxu0 %v931_v63 }
  0x61   :  { %847 = vmatpush3.bf16.msra.mxu0 %v932_v1 }
  0x62   :  { %848 = vmatprep.subr.bf16.mxu0 %v933_v2 }
  0x65   :  { %849 = vmatpush3.bf16.msra.mxu0 %v934_v3 }
  0x68   :  { %590 = vmatmul.mubr.bf16.vlgmr.msra.gmra.mrb[4].mxu0 %v69_v6 }
 0x11b   :  { %v806_v8 = vpop.f32.mrb[0].mxu0 }
 0x11c   :  { %v807_v10 = vpop.f32.mrb[1].mxu0 }
 0x11d   :  { %v808_v11 = vadd.f32 %v807_v10, %v806_v8  ;;  %v809_v12 = vpop.f32.mrb[2].mxu0  ;;  %v828_v13 = vpop.f32.mrb[0].mxu1 }
 0x11e   :  { %v810_v14 = vpop.f32.mrb[3].mxu0  ;;  %v829_v17 = vpop.f32.mrb[1].mxu1 }
 0x11f   :  { %v510_v15 = vadd.f32 %v808_v11, %v739_v9  ;;  %v811_v16 = vadd.f32 %v810_v14, %v809_v12  ;;  %v830_v18 = vadd.f32 %v829_v17, %v828_v13  ;;  %v831_v19 = vpop.f32.mrb[2].mxu1 }
 0x120   :  { %v832_v21 = vpop.f32.mrb[3].mxu1 }
 0x121   :  { %v513_v20 = vadd.f32 %v811_v16, %v739_v9  ;;  %v551_v22 = vadd.f32 %v830_v18, %v510_v15  ;;  %v833_v23 = vadd.f32 %v832_v21, %v831_v19 }
 0x123   :  { %v554_v24 = vadd.f32 %v833_v23, %v513_v20 }
 0x125   :  { %v632_v25 = vpop.f32.mrb[4].mxu1 }
 0x126   :  { %v865_v26 = vpop.f32.mrb[5].mxu1 }
 0x127   :  { %v635_v27 = vpop.f32.mrb[6].mxu1 }
 0x128   :  { %v866_v28 = vpop.f32.mrb[7].mxu1 }
 0x13b   :  { %v850_v29 = vpop.f32.mrb[4].mxu0 }
 0x13c   :  { %v851_v30 = vpop.f32.mrb[5].mxu0 }
 0x13d   :  { %v852_v31 = vadd.f32 %v851_v30, %v850_v29  ;;  %v853_v32 = vpop.f32.mrb[6].mxu0 }
 0x13e   :  { %v854_v33 = vpop.f32.mrb[7].mxu0 }
 0x13f   :  { %v592_v34 = vadd.f32 %v852_v31, %v551_v22  ;;  %v855_v35 = vadd.f32 %v854_v33, %v853_v32 }
 0x141   :  { %v633_v36 = vadd.f32 %v632_v25, %v592_v34  ;;  %v595_v37 = vadd.f32 %v855_v35, %v554_v24 }
 0x143   :  { %v639_v38 = vmul.f32 0.01, %v633_v36  ;;  %v636_v39 = vadd.f32 %v635_v27, %v595_v37 }
 0x145   :  { %v640_v40 = vmul.f32 0.01, %v636_v39  ;;  %v641_v41 = vmax.f32 %v633_v36, %v639_v38 }
 0x147   :  { %v642_v42 = vmax.f32 %v636_v39, %v640_v40 }
 0x149   :  { %v875_v43 = vpack.c.bf16 %v642_v42, %v641_v41 }
 0x14b   :  { %876 = vmatpush3.bf16.xpose.msra.mxu1 %v875_v43 }
 0x152   :  { %872 = vmatmul.mubr.f32.vlgmr.msra.gmra.mrb[8].mxu1 %v643_v44 }
 0x225   :  { %v712_v46 = vpop.f32.mrb[8].mxu1 }
 0x226   :  { %v713_v47 = vadd.f32 %v712_v46, %v645_v45  ;;  %v873_v48 = vpop.f32.mrb[9].mxu1 }
 0x228   :  { %v716_v49 = vsub.f32 0.0, %v713_v47 }
 0x22a   :  { %v717_v50 = vmul.f32 1.442695, %v716_v49 }
 0x22c   :  { %936 = vpow2.f32 %v717_v50 }
 0x236   :  { %v937_v51 = vpop.eup %936 }
 0x237   :  { %v719_v52 = vadd.f32 1.0, %v937_v51 }
 0x239   :  { %938 = vrcp.f32 %v719_v52 }
 0x243   :  { %v939_v53 = vpop.eup %938 }
 0x244   :  { %722 = vst.msk [vmem:[#allocation8] sm:$0x1] %vm721_vm2, %v939_v53 }
 0x245   :  { %995 = shalt.err (!%p992_p6)
}
 0x246   :  { %s996_s28 = scalar_lea.hbm %s1104_s5, 16 }
 0x247   :  { %p997_p7 = scmp.ne.s32.totalorder %s1104_s5, %s996_s28  ;;  %p1000_p8 = scmp.lt.u32.totalorder %s996_s28, %s1104_s5 }
 0x249   :  { %p1002_p9 = pnand %p1000_p8, %p997_p7 }
 0x24b   :  { %1005 = shalt.err (!%p1002_p9)
}
 0x24c   :  { %732 = dma.vmem_to_hbm [thread:$0]  %s730_s25, 16, %s1104_s5, [#allocation5]  }
 0x24d   :  { %1010 = dma.done.wait [#allocation5], 16  }
 0x24e   :  { %1011 = vsyncadd [#allocation5], 4294967280 }
 0x24f   :  { %736 = vsyncpa [#allocation4], 1 }
 0x250   :  { %737 = vsyncpa [#allocation7], 1 }
 0x251   :  { %738 = vsyncpa [#allocation5], 1 }

</bundles_post_ra>
